<compile_context>
chip_gen: v7x
topology: tpu7x:2x2x1
jax: 0.10.0
libtpu: 0.0.40
codegen_flags: <defaults>
</compile_context>

<pallas_src>
import functools

import jax
import jax.numpy as jnp
from jax import lax
from jax.experimental import pallas as pl
from jax.experimental.pallas import tpu as pltpu

_BF16_SUBLANE = 16                       # a bf16 vreg tile is (16, 128)
_VMEM_LIMIT = 48 * 1024 * 1024           # ~75% of v7x's 64 MiB physical VMEM
_SCRATCH_BUDGET = 24 * 1024 * 1024       # conservative per-step VMEM budget


def _conv_unit_kernel(x_ref, w_ref, b_ref, mask_ref, o_ref, xf_ref, col_ref,
                      *, K, H, W, pad, G, Cin_pad):
    """One group of G images per grid step.

    x_ref   : (G, Cin_pad, H*W)         bf16  flattened NCHW images (zero-padded channels)
    w_ref   : (Cout, K*K*Cin_pad)       bf16  folded conv(+BN) weights, column order (kh, kw, ci)
    b_ref   : (Cout, 1)                 f32   folded bias
    mask_ref: (K, H*W)                  bf16  per-kw width-validity masks (0/1)
    o_ref   : (G, Cout, H*W)            f32   lane-dense output (H*W on lanes)
    xf_ref  : (G*Cin_pad, H*W + 2*halo) bf16  scratch: zero-haloed flat images
    col_ref : (K*K*Cin_pad, G*H*W)      bf16  scratch: im2col matrix
    """
    HW = H * W
    halo = pad * (W + 1)

    # ---- fused zero padding: clear ONLY the two halo stripes -----------------
    # Done every step (not program_id-gated) so it stays correct when the grid
    # is sharded across TensorCores; the interior is fully overwritten below.
    for g in range(G):
        rows = pl.ds(g * Cin_pad, Cin_pad)
        if pad > 0:
            zhalo = jnp.zeros((Cin_pad, halo), dtype=xf_ref.dtype)
            xf_ref[rows, pl.ds(0, halo)] = zhalo
            xf_ref[rows, pl.ds(halo + HW, halo)] = zhalo
        xf_ref[rows, pl.ds(halo, HW)] = x_ref[g]

    # ---- im2col (K*K*Cin_pad, G*HW) from lane-shifted windows ----------------
    # Cin is padded to the bf16 sublane tile, so every store here is a full-tile
    # unmasked vst (row offset t*Cin_pad and per-image column offset g*HW are
    # both tile-aligned).  Height out-of-range taps read the zero halo; width
    # out-of-range positions are killed by the per-kw lane mask.
    # TODO(synk): for large Cin, accumulate per-tap matmuls instead of im2col.
    for kh in range(K):
        for kw in range(K):
            t = kh * K + kw
            for g in range(G):
                patch = xf_ref[pl.ds(g * Cin_pad, Cin_pad),
                               pl.ds(kh * W + kw, HW)]          # (Cin_pad, HW)
                if kw != pad:                                   # width-edge taps only
                    patch = patch * mask_ref[pl.ds(kw, 1), :]   # (1, HW) lane mask
                col_ref[pl.ds(t * Cin_pad, Cin_pad), pl.ds(g * HW, HW)] = patch

    # ---- single bf16 MXU contraction (depth K*K*Cin_pad), f32 accumulate -----
    acc = jnp.dot(w_ref[...], col_ref[...],
                  preferred_element_type=jnp.float32)           # (Cout, G*HW) f32

    # ---- epilogue: +bias, ReLU in f32; lane-dense (Cout, HW) store per image --
    bias = b_ref[...]
    for g in range(G):
        o_ref[g] = jnp.maximum(acc[:, g * HW:(g + 1) * HW] + bias,
                               0.0).astype(o_ref.dtype)


def _pick_group_size(N, Cin_pad, Cout, HW, halo, KK,
                     budget_bytes=_SCRATCH_BUDGET):
    """Images per grid step, sized against a conservative VMEM budget."""
    bf16, f32 = 2, 4
    # grid-invariant operands (double-buffered by the default pipeline)
    fixed = 2 * (Cout * KK * Cin_pad * bf16 + Cout * f32 + KK * HW * bf16)
    per_img = (Cin_pad * (HW + 2 * halo) * bf16      # haloed-image scratch
               + KK * Cin_pad * HW * bf16            # im2col scratch
               + 2 * Cin_pad * HW * bf16             # x block (double buffered)
               + 2 * Cout * HW * f32)                # out block (double buffered)
    G = max(1, min(N, (budget_bytes - fixed) // max(per_img, 1)))
    if N > 1:
        # keep the grid at >= 2 steps so both v7x TensorCores get work
        G = min(G, (N + 1) // 2)
    return int(G)


def conv_unit_forward(x_nchw, weight, bias, *, stride=1, bn=False,
                      gamma=None, beta=None, running_mean=None,
                      running_var=None, eps=1e-3):
    """ConvUnit forward.  x_nchw: (N, Cin, H, W); weight: (Cout, Cin, K, K)."""
    N, Cin, H, W = x_nchw.shape
    Cout, Cin_w, K, K2 = weight.shape
    assert Cin == Cin_w and K == K2
    assert K % 2 == 1, "ConvUnit uses padding=(K-1)//2; even K is not supported"
    assert stride == 1, "only stride=1 implemented"  # TODO(synk): strided conv
    pad = (K - 1) // 2
    HW = H * W
    halo = pad * (W + 1)
    KK = K * K

    w = weight.astype(jnp.float32)
    b = bias.astype(jnp.float32)
    if bn:
        # Eval-mode BatchNorm folded into the conv weights & bias.
        # TODO(synk): training-mode BN (batch statistics / running-stat updates)
        #             is not reproduced here.
        inv_std = lax.rsqrt(running_var.astype(jnp.float32) + eps)
        scale = gamma.astype(jnp.float32) * inv_std                        # (Cout,)
        shift = beta.astype(jnp.float32) - running_mean.astype(jnp.float32) * scale
        w = w * scale[:, None, None, None]
        b = b * scale + shift

    # Pad Cin up to the bf16 sublane tile so every in-kernel im2col / halo store
    # is a full-tile unmasked vst (production Cin is usually already a multiple).
    Cin_pad = -(-Cin // _BF16_SUBLANE) * _BF16_SUBLANE

    # (Cout, Cin, K, K) -> (Cout, K, K, Cin_pad) -> (Cout, K*K*Cin_pad) bf16,
    # matching the (kh, kw, ci) im2col row order built in the kernel.
    w_t = jnp.transpose(w, (0, 2, 3, 1))
    if Cin_pad != Cin:
        w_t = jnp.pad(w_t, ((0, 0), (0, 0), (0, 0), (0, Cin_pad - Cin)))
    w2 = w_t.reshape(Cout, KK * Cin_pad).astype(jnp.bfloat16)
    b2 = b.reshape(Cout, 1)                                    # stays f32

    # Width-validity mask per kw tap (height handled by the in-kernel zero halo).
    wcol = jnp.arange(HW, dtype=jnp.int32) % W
    masks = jnp.stack(
        [((wcol >= (pad - kw)) & (wcol < (W + pad - kw))) for kw in range(K)],
        axis=0).astype(jnp.bfloat16)                           # (K, HW)

    # bf16 activations (MXU-native; f32 accumulate in-kernel), padded channels,
    # flattened spatial axis (free reshape: H, W contiguous in NCHW).
    x = x_nchw.astype(jnp.bfloat16)
    if Cin_pad != Cin:
        x = jnp.pad(x, ((0, 0), (0, Cin_pad - Cin), (0, 0), (0, 0)))
    x_flat = x.reshape(N, Cin_pad, HW)

    # Batch G images per grid step to amortize per-step overhead / MXU latch.
    G = _pick_group_size(N, Cin_pad, Cout, HW, halo, KK)
    n_steps = -(-N // G)
    N_pad = n_steps * G
    if N_pad != N:
        x_flat = jnp.pad(x_flat, ((0, N_pad - N), (0, 0), (0, 0)))

    kernel = functools.partial(_conv_unit_kernel, K=K, H=H, W=W, pad=pad,
                               G=G, Cin_pad=Cin_pad)

    out_flat = pl.pallas_call(
        kernel,
        out_shape=jax.ShapeDtypeStruct((N_pad, Cout, HW), jnp.float32),
        grid_spec=pltpu.PrefetchScalarGridSpec(
            num_scalar_prefetch=0,
            grid=(n_steps,),
            in_specs=[
                pl.BlockSpec((G, Cin_pad, HW), lambda n: (n, 0, 0)),
                pl.BlockSpec((Cout, KK * Cin_pad), lambda n: (0, 0)),
                pl.BlockSpec((Cout, 1), lambda n: (0, 0)),
                pl.BlockSpec((K, HW), lambda n: (0, 0)),
            ],
            out_specs=pl.BlockSpec((G, Cout, HW), lambda n: (n, 0, 0)),
            scratch_shapes=[
                pltpu.VMEM((G * Cin_pad, HW + 2 * halo), jnp.bfloat16),  # haloed imgs
                pltpu.VMEM((KK * Cin_pad, G * HW), jnp.bfloat16),        # im2col
            ],
        ),
        compiler_params=pltpu.CompilerParams(
            dimension_semantics=("parallel",),
            vmem_limit_bytes=_VMEM_LIMIT),
    )(x_flat, w2, b2, masks)

    out = out_flat.reshape(N_pad, Cout, H, W)   # free reshape back to NCHW
    return out[:N] if N_pad != N else out


# ----------------------------- pure-JAX references -----------------------------

def _conv_bias_relu_ref(x, weight, bias):
    pad = (weight.shape[-1] - 1) // 2
    y = lax.conv_general_dilated(
        x.astype(jnp.float32), weight.astype(jnp.float32),
        window_strides=(1, 1), padding=((pad, pad), (pad, pad)),
        dimension_numbers=("NCHW", "OIHW", "NCHW"),
        precision=lax.Precision.HIGHEST)
    return jnp.maximum(y + bias.reshape(1, -1, 1, 1), 0.0)


def _conv_bn_relu_ref(x, weight, bias, gamma, beta, mean, var, eps):
    pad = (weight.shape[-1] - 1) // 2
    y = lax.conv_general_dilated(
        x.astype(jnp.float32), weight.astype(jnp.float32),
        window_strides=(1, 1), padding=((pad, pad), (pad, pad)),
        dimension_numbers=("NCHW", "OIHW", "NCHW"),
        precision=lax.Precision.HIGHEST)
    y = y + bias.reshape(1, -1, 1, 1)
    y = (y - mean.reshape(1, -1, 1, 1)) * lax.rsqrt(var.reshape(1, -1, 1, 1) + eps)
    y = y * gamma.reshape(1, -1, 1, 1) + beta.reshape(1, -1, 1, 1)
    return jnp.maximum(y, 0.0)


def _fold_bn(weight, bias, gamma, beta, mean, var, eps):
    inv_std = lax.rsqrt(var.astype(jnp.float32) + eps)
    scale = gamma.astype(jnp.float32) * inv_std
    shift = beta.astype(jnp.float32) - mean.astype(jnp.float32) * scale
    return (weight.astype(jnp.float32) * scale[:, None, None, None],
            bias.astype(jnp.float32) * scale + shift)


def _q(a):  # mimic the kernel's bf16 operand cast
    return a.astype(jnp.bfloat16).astype(jnp.float32)


if __name__ == "__main__":
    # ConvUnit(in_channels=4, out_channels=8, kernel_size=3)
    N, Cin, H, W = 2, 4, 16, 16
    Cout, K = 8, 3

    key = jax.random.PRNGKey(0)
    kx, kw_, kb, kg, kbe, km, kv = jax.random.split(key, 7)
    x = jax.random.normal(kx, (N, Cin, H, W), dtype=jnp.float32)
    fan_in = Cin * K * K
    weight = jax.random.uniform(kw_, (Cout, Cin, K, K), jnp.float32,
                                minval=-1.0, maxval=1.0) / jnp.sqrt(fan_in)
    bias = jax.random.uniform(kb, (Cout,), jnp.float32,
                              minval=-1.0, maxval=1.0) / jnp.sqrt(fan_in)

    # --- bn=False path (Conv + ReLU) ---
    out = jax.block_until_ready(conv_unit_forward(x, weight, bias, bn=False))
    assert out.shape == (N, Cout, H, W), out.shape
    # tight check vs a reference on the same bf16-quantized operands
    # (validates conv / halo / mask logic independent of bf16 rounding)
    ref_q = _conv_bias_relu_ref(_q(x), _q(weight), bias)
    assert jnp.allclose(out, ref_q, atol=2e-3, rtol=2e-3), "bn=False mismatch vs quantized ref"
    # loose check vs the full-f32 reference (bf16 operand rounding only)
    ref_f = _conv_bias_relu_ref(x, weight, bias)
    assert jnp.allclose(out, ref_f, atol=1e-1, rtol=1e-1), "bn=False mismatch vs f32 ref"

    # --- bn=True path (Conv + eval-mode BN + ReLU), eps=0.001 as in ConvUnit ---
    gamma = jax.random.uniform(kg, (Cout,), jnp.float32, minval=0.5, maxval=1.5)
    beta = 0.1 * jax.random.normal(kbe, (Cout,), dtype=jnp.float32)
    rmean = 0.1 * jax.random.normal(km, (Cout,), dtype=jnp.float32)
    rvar = jax.random.uniform(kv, (Cout,), jnp.float32, minval=0.5, maxval=1.5)
    out_bn = jax.block_until_ready(
        conv_unit_forward(x, weight, bias, bn=True, gamma=gamma, beta=beta,
                          running_mean=rmean, running_var=rvar, eps=1e-3))
    wf, bf = _fold_bn(weight, bias, gamma, beta, rmean, rvar, 1e-3)
    ref_bn_q = _conv_bias_relu_ref(_q(x), _q(wf), bf)
    assert jnp.allclose(out_bn, ref_bn_q, atol=2e-3, rtol=2e-3), "bn=True mismatch vs quantized ref"
    ref_bn_f = _conv_bn_relu_ref(x, weight, bias, gamma, beta, rmean, rvar, 1e-3)
    assert jnp.allclose(out_bn, ref_bn_f, atol=1e-1, rtol=1e-1), "bn=True mismatch vs f32 ref"

    print("KERNEL_OK")
</pallas_src>

<mosaic_0001>
module attributes {stable_mosaic.version = 11 : i64} {
  func.func @_conv_unit_kernel(%arg0: i32, %arg1: memref<1x16x256xbf16, #tpu.memory_space<vmem>>, %arg2: memref<8x144xbf16, #tpu.memory_space<vmem>>, %arg3: memref<8x1xf32, #tpu.memory_space<vmem>>, %arg4: memref<3x256xbf16, #tpu.memory_space<vmem>>, %arg5: memref<1x8x256xf32, #tpu.memory_space<vmem>>, %arg6: memref<16x290xbf16, #tpu.memory_space<vmem>>, %arg7: memref<144x256xbf16, #tpu.memory_space<vmem>>) attributes {dimension_semantics = [#tpu.dimension_semantics<parallel>], iteration_bounds = array<i64: 2>, scalar_prefetch = 0 : i64, scratch_operands = 2 : i64, tpu.core_type = #tpu.core_type<tc>, window_params = [{transform_indices = @transform_0, window_bounds = array<i64: 1, 16, 256>}, {pipeline_mode = #tpu.pipeline_mode<synchronous>, transform_indices = @transform_1, window_bounds = array<i64: 8, 144>}, {pipeline_mode = #tpu.pipeline_mode<synchronous>, transform_indices = @transform_2, window_bounds = array<i64: 8, 1>}, {pipeline_mode = #tpu.pipeline_mode<synchronous>, transform_indices = @transform_3, window_bounds = array<i64: 3, 256>}, {transform_indices = @transform_4, window_bounds = array<i64: 1, 8, 256>}]} {
    %cst = arith.constant 0.000000e+00 : bf16
    %0 = vector.broadcast %cst : bf16 to vector<16x17xbf16>
    %c0 = arith.constant 0 : index
    %c0_0 = arith.constant 0 : index
    %1 = vector.load %arg6[%c0, %c0_0] : memref<16x290xbf16, #tpu.memory_space<vmem>>, vector<16x17xbf16>
    tpu.vector_store %arg6[%c0, %c0_0], %0 {strides = array<i32>} : memref<16x290xbf16, #tpu.memory_space<vmem>>, vector<16x17xbf16>,
    %c0_1 = arith.constant 0 : index
    %c273 = arith.constant 273 : index
    %2 = vector.load %arg6[%c0_1, %c273] : memref<16x290xbf16, #tpu.memory_space<vmem>>, vector<16x17xbf16>
    tpu.vector_store %arg6[%c0_1, %c273], %0 {strides = array<i32>} : memref<16x290xbf16, #tpu.memory_space<vmem>>, vector<16x17xbf16>,
    %c0_2 = arith.constant 0 : index
    %c0_3 = arith.constant 0 : index
    %c0_4 = arith.constant 0 : index
    %3 = vector.load %arg1[%c0_2, %c0_3, %c0_4] : memref<1x16x256xbf16, #tpu.memory_space<vmem>>, vector<1x16x256xbf16>
    %4 = vector.shape_cast %3 : vector<1x16x256xbf16> to vector<16x256xbf16>
    %c0_5 = arith.constant 0 : index
    %c17 = arith.constant 17 : index
    %5 = vector.load %arg6[%c0_5, %c17] : memref<16x290xbf16, #tpu.memory_space<vmem>>, vector<16x256xbf16>
    tpu.vector_store %arg6[%c0_5, %c17], %4 {strides = array<i32>} : memref<16x290xbf16, #tpu.memory_space<vmem>>, vector<16x256xbf16>,
    %c0_6 = arith.constant 0 : index
    %c0_7 = arith.constant 0 : index
    %6 = vector.load %arg6[%c0_6, %c0_7] : memref<16x290xbf16, #tpu.memory_space<vmem>>, vector<16x256xbf16>
    %c0_8 = arith.constant 0 : index
    %c0_9 = arith.constant 0 : index
    %7 = vector.load %arg4[%c0_8, %c0_9] : memref<3x256xbf16, #tpu.memory_space<vmem>>, vector<1x256xbf16>
    %8 = vector.broadcast %7 : vector<1x256xbf16> to vector<16x256xbf16>
    %9 = arith.mulf %6, %8 : vector<16x256xbf16>
    %c0_10 = arith.constant 0 : index
    %c0_11 = arith.constant 0 : index
    %10 = vector.load %arg7[%c0_10, %c0_11] : memref<144x256xbf16, #tpu.memory_space<vmem>>, vector<16x256xbf16>
    tpu.vector_store %arg7[%c0_10, %c0_11], %9 {strides = array<i32>} : memref<144x256xbf16, #tpu.memory_space<vmem>>, vector<16x256xbf16>,
    %c0_12 = arith.constant 0 : index
    %c1 = arith.constant 1 : index
    %11 = vector.load %arg6[%c0_12, %c1] : memref<16x290xbf16, #tpu.memory_space<vmem>>, vector<16x256xbf16>
    %c16 = arith.constant 16 : index
    %c0_13 = arith.constant 0 : index
    %12 = vector.load %arg7[%c16, %c0_13] : memref<144x256xbf16, #tpu.memory_space<vmem>>, vector<16x256xbf16>
    tpu.vector_store %arg7[%c16, %c0_13], %11 {strides = array<i32>} : memref<144x256xbf16, #tpu.memory_space<vmem>>, vector<16x256xbf16>,
    %c0_14 = arith.constant 0 : index
    %c2 = arith.constant 2 : index
    %13 = vector.load %arg6[%c0_14, %c2] : memref<16x290xbf16, #tpu.memory_space<vmem>>, vector<16x256xbf16>
    %c2_15 = arith.constant 2 : index
    %c0_16 = arith.constant 0 : index
    %14 = vector.load %arg4[%c2_15, %c0_16] : memref<3x256xbf16, #tpu.memory_space<vmem>>, vector<1x256xbf16>
    %15 = vector.broadcast %14 : vector<1x256xbf16> to vector<16x256xbf16>
    %16 = arith.mulf %13, %15 : vector<16x256xbf16>
    %c32 = arith.constant 32 : index
    %c0_17 = arith.constant 0 : index
    %17 = vector.load %arg7[%c32, %c0_17] : memref<144x256xbf16, #tpu.memory_space<vmem>>, vector<16x256xbf16>
    tpu.vector_store %arg7[%c32, %c0_17], %16 {strides = array<i32>} : memref<144x256xbf16, #tpu.memory_space<vmem>>, vector<16x256xbf16>,
    %c0_18 = arith.constant 0 : index
    %c16_19 = arith.constant 16 : index
    %18 = vector.load %arg6[%c0_18, %c16_19] : memref<16x290xbf16, #tpu.memory_space<vmem>>, vector<16x256xbf16>
    %c0_20 = arith.constant 0 : index
    %c0_21 = arith.constant 0 : index
    %19 = vector.load %arg4[%c0_20, %c0_21] : memref<3x256xbf16, #tpu.memory_space<vmem>>, vector<1x256xbf16>
    %20 = vector.broadcast %19 : vector<1x256xbf16> to vector<16x256xbf16>
    %21 = arith.mulf %18, %20 : vector<16x256xbf16>
    %c48 = arith.constant 48 : index
    %c0_22 = arith.constant 0 : index
    %22 = vector.load %arg7[%c48, %c0_22] : memref<144x256xbf16, #tpu.memory_space<vmem>>, vector<16x256xbf16>
    tpu.vector_store %arg7[%c48, %c0_22], %21 {strides = array<i32>} : memref<144x256xbf16, #tpu.memory_space<vmem>>, vector<16x256xbf16>,
    %c0_23 = arith.constant 0 : index
    %c17_24 = arith.constant 17 : index
    %23 = vector.load %arg6[%c0_23, %c17_24] : memref<16x290xbf16, #tpu.memory_space<vmem>>, vector<16x256xbf16>
    %c64 = arith.constant 64 : index
    %c0_25 = arith.constant 0 : index
    %24 = vector.load %arg7[%c64, %c0_25] : memref<144x256xbf16, #tpu.memory_space<vmem>>, vector<16x256xbf16>
    tpu.vector_store %arg7[%c64, %c0_25], %23 {strides = array<i32>} : memref<144x256xbf16, #tpu.memory_space<vmem>>, vector<16x256xbf16>,
    %c0_26 = arith.constant 0 : index
    %c18 = arith.constant 18 : index
    %25 = vector.load %arg6[%c0_26, %c18] : memref<16x290xbf16, #tpu.memory_space<vmem>>, vector<16x256xbf16>
    %c2_27 = arith.constant 2 : index
    %c0_28 = arith.constant 0 : index
    %26 = vector.load %arg4[%c2_27, %c0_28] : memref<3x256xbf16, #tpu.memory_space<vmem>>, vector<1x256xbf16>
    %27 = vector.broadcast %26 : vector<1x256xbf16> to vector<16x256xbf16>
    %28 = arith.mulf %25, %27 : vector<16x256xbf16>
    %c80 = arith.constant 80 : index
    %c0_29 = arith.constant 0 : index
    %29 = vector.load %arg7[%c80, %c0_29] : memref<144x256xbf16, #tpu.memory_space<vmem>>, vector<16x256xbf16>
    tpu.vector_store %arg7[%c80, %c0_29], %28 {strides = array<i32>} : memref<144x256xbf16, #tpu.memory_space<vmem>>, vector<16x256xbf16>,
    %c0_30 = arith.constant 0 : index
    %c32_31 = arith.constant 32 : index
    %30 = vector.load %arg6[%c0_30, %c32_31] : memref<16x290xbf16, #tpu.memory_space<vmem>>, vector<16x256xbf16>
    %c0_32 = arith.constant 0 : index
    %c0_33 = arith.constant 0 : index
    %31 = vector.load %arg4[%c0_32, %c0_33] : memref<3x256xbf16, #tpu.memory_space<vmem>>, vector<1x256xbf16>
    %32 = vector.broadcast %31 : vector<1x256xbf16> to vector<16x256xbf16>
    %33 = arith.mulf %30, %32 : vector<16x256xbf16>
    %c96 = arith.constant 96 : index
    %c0_34 = arith.constant 0 : index
    %34 = vector.load %arg7[%c96, %c0_34] : memref<144x256xbf16, #tpu.memory_space<vmem>>, vector<16x256xbf16>
    tpu.vector_store %arg7[%c96, %c0_34], %33 {strides = array<i32>} : memref<144x256xbf16, #tpu.memory_space<vmem>>, vector<16x256xbf16>,
    %c0_35 = arith.constant 0 : index
    %c33 = arith.constant 33 : index
    %35 = vector.load %arg6[%c0_35, %c33] : memref<16x290xbf16, #tpu.memory_space<vmem>>, vector<16x256xbf16>
    %c112 = arith.constant 112 : index
    %c0_36 = arith.constant 0 : index
    %36 = vector.load %arg7[%c112, %c0_36] : memref<144x256xbf16, #tpu.memory_space<vmem>>, vector<16x256xbf16>
    tpu.vector_store %arg7[%c112, %c0_36], %35 {strides = array<i32>} : memref<144x256xbf16, #tpu.memory_space<vmem>>, vector<16x256xbf16>,
    %c0_37 = arith.constant 0 : index
    %c34 = arith.constant 34 : index
    %37 = vector.load %arg6[%c0_37, %c34] : memref<16x290xbf16, #tpu.memory_space<vmem>>, vector<16x256xbf16>
    %c2_38 = arith.constant 2 : index
    %c0_39 = arith.constant 0 : index
    %38 = vector.load %arg4[%c2_38, %c0_39] : memref<3x256xbf16, #tpu.memory_space<vmem>>, vector<1x256xbf16>
    %39 = vector.broadcast %38 : vector<1x256xbf16> to vector<16x256xbf16>
    %40 = arith.mulf %37, %39 : vector<16x256xbf16>
    %c128 = arith.constant 128 : index
    %c0_40 = arith.constant 0 : index
    %41 = vector.load %arg7[%c128, %c0_40] : memref<144x256xbf16, #tpu.memory_space<vmem>>, vector<16x256xbf16>
    tpu.vector_store %arg7[%c128, %c0_40], %40 {strides = array<i32>} : memref<144x256xbf16, #tpu.memory_space<vmem>>, vector<16x256xbf16>,
    %c0_41 = arith.constant 0 : index
    %c0_42 = arith.constant 0 : index
    %42 = vector.load %arg2[%c0_41, %c0_42] : memref<8x144xbf16, #tpu.memory_space<vmem>>, vector<8x144xbf16>
    %c0_43 = arith.constant 0 : index
    %c0_44 = arith.constant 0 : index
    %43 = vector.load %arg7[%c0_43, %c0_44] : memref<144x256xbf16, #tpu.memory_space<vmem>>, vector<144x256xbf16>
    %cst_45 = arith.constant dense<0.000000e+00> : vector<8x256xf32>
    %44 = tpu.matmul %42, %43, %cst_45 {dimension_numbers = #tpu.dot_dimension_numbers<[1], [0], [0], [1], [0, 0, 1, 1], [], []>} : vector<8x144xbf16>, vector<144x256xbf16>, vector<8x256xf32> -> vector<8x256xf32>
    %c0_46 = arith.constant 0 : index
    %c0_47 = arith.constant 0 : index
    %45 = vector.load %arg3[%c0_46, %c0_47] : memref<8x1xf32, #tpu.memory_space<vmem>>, vector<8x1xf32>
    %46 = vector.broadcast %45 : vector<8x1xf32> to vector<8x256xf32>
    %47 = arith.addf %44, %46 : vector<8x256xf32>
    %cst_48 = arith.constant 0.000000e+00 : f32
    %48 = vector.broadcast %cst_48 : f32 to vector<8x256xf32>
    %49 = arith.maximumf %47, %48 : vector<8x256xf32>
    %c0_49 = arith.constant 0 : index
    %c0_50 = arith.constant 0 : index
    %c0_51 = arith.constant 0 : index
    %50 = vector.load %arg5[%c0_49, %c0_50, %c0_51] : memref<1x8x256xf32, #tpu.memory_space<vmem>>, vector<1x8x256xf32>
    %51 = vector.shape_cast %50 : vector<1x8x256xf32> to vector<8x256xf32>
    %52 = vector.shape_cast %49 : vector<8x256xf32> to vector<1x8x256xf32>
    tpu.vector_store %arg5[%c0_49, %c0_50, %c0_51], %52 {strides = array<i32>} : memref<1x8x256xf32, #tpu.memory_space<vmem>>, vector<1x8x256xf32>,
    return
  }
  func.func @transform_0(%arg0: i32) -> (i32, i32, i32) {
    %c0_i32 = arith.constant 0 : i32
    %c0_i32_0 = arith.constant 0 : i32
    %c0_i32_1 = arith.constant 0 : i32
    return %arg0, %c0_i32, %c0_i32_0 : i32, i32, i32
  }
  func.func @transform_1(%arg0: i32) -> (i32, i32) {
    %c0_i32 = arith.constant 0 : i32
    %c0_i32_0 = arith.constant 0 : i32
    %c0_i32_1 = arith.constant 0 : i32
    return %c0_i32, %c0_i32_0 : i32, i32
  }
  func.func @transform_2(%arg0: i32) -> (i32, i32) {
    %c0_i32 = arith.constant 0 : i32
    %c0_i32_0 = arith.constant 0 : i32
    %c0_i32_1 = arith.constant 0 : i32
    return %c0_i32, %c0_i32_0 : i32, i32
  }
  func.func @transform_3(%arg0: i32) -> (i32, i32) {
    %c0_i32 = arith.constant 0 : i32
    %c0_i32_0 = arith.constant 0 : i32
    %c0_i32_1 = arith.constant 0 : i32
    return %c0_i32, %c0_i32_0 : i32, i32
  }
  func.func @transform_4(%arg0: i32) -> (i32, i32, i32) {
    %c0_i32 = arith.constant 0 : i32
    %c0_i32_0 = arith.constant 0 : i32
    %c0_i32_1 = arith.constant 0 : i32
    return %arg0, %c0_i32, %c0_i32_0 : i32, i32, i32
  }
}

</mosaic_0001>

<bundles_post_ra>
// kernel: tpu_custom_call.1
= control target key start
LH: loop header
LB: loop body
LE: loop exit
PB: predicated region body
PF: predicated region fallthrough
CT: control target
= control target key end

     0   :  { %9 = vsyncpa [#allocation5], 0  ;;  %s1238_s0 = inlined_call_operand.hbm [shape: bf16[2,16,256], index: 0, kind: input, shape index: {}]   ;;  %s1239_s1 = inlined_call_operand.vmem [shape: bf16[8,144], index: 1, kind: input, shape index: {}]   ;;  %s1240_s2 = inlined_call_operand.vmem [shape: f32[8,1], index: 2, kind: input, shape index: {}]   ;;  %s1241_s3 = inlined_call_operand.vmem [shape: bf16[3,256], index: 3, kind: input, shape index: {}]   ;;  %s1242_s4 = inlined_call_operand.hbm [shape: f32[2,8,256], index: 4, kind: output, shape index: {}]  }
   0x1   :  { %11 = vsyncpa [#allocation5 + $0x1], 0 }
   0x2   :  { %12 = vsyncpa [#allocation6], 0 }
   0x3   :  { %14 = vsyncpa [#allocation6 + $0x1], 0  ;;  %s1019_s15 = smov 0   ;;  %s1021_s16 = smov 0  }
   0x4   :  { %s1023_s17 = smov 0   ;;  %s1025_s18 = smov 0  }
   0x5 LB: > { %s1040_s19 = sadd.s32 4294967295, %s973_s18   ;;  %s781_s20 = sadd.s32 4294967294, %s973_s18   ;;  %s973_s18 = sphi %s1025_s18, %s1255_s18   ;;  %s969_s17 = sphi %s1023_s17, %s1254_s17   ;;  %s965_s16 = sphi %s1021_s16, %s1253_s16   ;;  %s961_s15 = sphi %s1019_s15, %s1252_s15  }
   0x6   : > { %s1044_s21 = sadd.s32 1, %s973_s18   ;;  %s27_s22 = sadd.s32 1, %s969_s17 }
   0x7   : > { %s24_s23 = ssub.s32 %s973_s18, %s1044_s21  ;;  %p34_p0 = scmp.ne.s32.totalorder %s969_s17, %s965_s16 }
   0x8   : > { %p25_p1 = scmp.eq.s32.totalorder %s24_s23, 0  ;;  %p35_p2 = scmp.eq.s32.totalorder %s973_s18, 0 }
   0x9   : > { %p40_p3 = scmp.ne.s32.totalorder %s965_s16, %s961_s15  ;;  %p41_p4 = scmp.eq.s32.totalorder %s1040_s19, 0 }
   0xa   : > { %s1056_s24 = scalar_select %p25_p1, %s969_s17, %s27_s22  }
   0xb   : > { %p1058_p5 = por %p35_p2, %p34_p0  ;;  %p1062_p6 = por %p41_p4, %p40_p3 }
   0xc   : > { %p127_p7 = scmp.eq.s32.totalorder %s1040_s19, 1  ;;  %p133_p8 = scmp.eq.s32.totalorder %s781_s20, 1 }
   0xd   : > { %p820_p10 = scmp.lt.s32.totalorder %s973_s18, 2  ;;  %s162_s29 = sand.u32 1, %s969_s17  }
   0xe   : > { %p1069_p11 = por %p127_p7, %p34_p0  ;;  %p1073_p12 = por %p133_p8, %p40_p3 }
   0xf   : > { %s806_s30 = sshll.u32 %s973_s18, 8  ;;  %s784_s5 = sshll.u32 %s162_s29, 4 }
  0x10   : > { %s1246_s27 = scalar_select %p1069_p11, 1, 0 }
  0x11   : > { %s1247_s28 = scalar_select %p1073_p12, 1, 0 }
  0x12   : > { %s1082_s8 = scalar_lea.hbm %s1238_s0, %s806_s30  ;;  %s166_s9 = scalar_lea.vmem [#allocation4], %s784_s5 }
  0x13   : > { %s173_s10 = sshll.u32 %s166_s9, 4  ;;  %p1086_p13 = pnand %p820_p10, %p1058_p5  ;;  %s1090_s10 = int_to_ptr.vmem [resolvable:$true] %s173_s10 }
  0x14   : > { %s1092_s12 = scalar_lea.sflag [#allocation5], %s162_s29  ;;  %s877_s13 = scalar_lea.hbm %s1082_s8, 256 }
  0x15   : > { %p878_p0 = scmp.ne.s32.totalorder %s1082_s8, %s877_s13  ;;  %p879_p1 = pneg %p1086_p13 }
  0x16   : > { %s882_s22 = scalar_lea.hbm %s1238_s0, 512  ;;  %p883_p4 = scmp.lt.u32.totalorder %s1082_s8, %s1238_s0 }
  0x17   : > { %p880_p2 = pnand %p879_p1, %p878_p0  ;;  %p884_p5 = scmp.lt.u32.totalorder %s882_s22, %s877_s13 }
  0x18   : > { %p886_p8 = scmp.lt.u32.totalorder %s877_s13, %s1082_s8 }
  0x19   : > { %p881_p3 = pneg %p880_p2  ;;  %p885_p7 = por %p884_p5, %p883_p4 }
  0x1b   : > { %p887_p10 = por %p886_p8, %p885_p7 }
  0x1d   : > { %p888_p9 = pnand %p887_p10, %p881_p3 }
  0x1f   : > { %891 = shalt.err (!%p888_p9)
}
  0x20   : > { %s892_s29 = scalar_lea.vmem %s1090_s10, 256  ;;  %s975_s30 = smov [#allocation4]  }
  0x21   : > { %p893_p0 = scmp.ne.s32.totalorder %s1090_s10, %s892_s29  ;;  %s897_s5 = sshll.u32 %s975_s30, 4  ;;  %s898_s5 = int_to_ptr.vmem [resolvable:$false] %s897_s5 }
  0x22   : > { %s899_s6 = scalar_lea.vmem %s898_s5, 512  ;;  %p900_p11 = scmp.lt.s32.totalorder %s1090_s10, %s898_s5 }
  0x23   : > { %p895_p2 = pnand %p893_p0, %p879_p1  ;;  %p901_p4 = scmp.lt.s32.totalorder %s899_s6, %s892_s29 }
  0x25   : > { %p896_p12 = pneg %p895_p2  ;;  %p902_p5 = por %p901_p4, %p900_p11 }
  0x27   : > { %p903_p7 = pnand %p902_p5, %p896_p12 }
  0x29   : > { %906 = shalt.err (!%p903_p7)
}
  0x2a   : > { %s976_s7 = smov 128   ;;  %s977_s9 = smov 8  }
  0x2b   : > { %815 = dma.hbm_to_vmem [thread:$0]  (!%p1086_p13), %s1082_s8, 256, %s1090_s10, %s1092_s12, %s976_s7, %s976_s7, %s977_s9  }
  0x2c   : > { %p787_p9 = scmp.ge.s32.totalorder %s973_s18, 1  ;;  %p181_p1 = scmp.lt.s32.totalorder %s973_s18, 3 }
  0x2e   : > { %p182_p3 = pnand %p787_p9, %p181_p1 }
  0x2f   : > { %s1123_s13 = sand.u32 (!%p182_p3), 1, %s965_s16  }
  0x30   : > { %185 = sbr.rel (%p182_p3) target bundleno = 579 (0x243), region = 36  ;;  %s788_s14 = sshll.u32 (!%p182_p3), %s1123_s13, 4 }
  0x31   : > { %s188_s20 = scalar_lea.sflag (!%p182_p3), [#allocation5], %s1123_s13  ;;  %s191_s22 = scalar_lea.vmem (!%p182_p3), [#allocation4], %s788_s14 }
  0x37   : > { %952 = dma.done.wait (%p1062_p6), %s188_s20, 256  }
  0x38   : > { %954 = vsyncadd (%p1062_p6), %s188_s20, 4294967040  ;;  %v259_v0 = vlaneseq  ;;  %vm217_vm0 = vcmask 138240   ;;  %v978_v1 = vmov 0   ;;  %vm219_vm1 = vcmask 277640   ;;  %v872_v3 = vld [vmem:[%s191_s22] ss:$8 sps:$4 sm:$0xff]  }
  0x39   : > { %218 = vst.msk [vmem:[#allocation2] sm:$0xff] %vm217_vm0, %v978_v1  ;;  %871 = vset.pattern.permute.xlu0 %v978_v1  ;;  %v793_v5 = vld.sshfl [vmem:[%s1241_s3] sm:$0x22 pattern:$0x76325410]  ;;  %s979_s11 = smov 17  }
  0x3a   : > { %220 = vst.msk [vmem:[#allocation2 + $0x10] sm:$0xff] %vm219_vm1, %v978_v1  ;;  %v260_v2 = vshrl.u32 %v259_v0, 7  ;;  %v874_v7 = vld [vmem:[%s191_s22 + $0x4] ss:$8 sps:$4 sm:$0xff]   ;;  %231 = vrot.lane.b32.xlu0 %v872_v3, %s979_s11  ;;  %v307_v8 = vpack.i.b16 %v793_v5, %v793_v5  ;;  %v305_v9 = vcombine.high %v793_v5, %v793_v5  ;;  %s980_s23 = smov 2   ;;  %s981_s25 = smov 16  }
  0x3b   : > { %v794_v10 = vld.sshfl [vmem:[%s1241_s3] sm:$0x11 pattern:$0x76325410]  ;;  %s982_s29 = smov 18   ;;  %s983_s30 = smov 32  }
  0x3c   : > { %v311_v4 = vsub.s32 1, %v260_v2  ;;  %v261_v6 = vsub.s32 0, %v260_v2  ;;  %v364_v11 = vpack.i.b16 %v794_v10, %v794_v10  ;;  %v362_v12 = vcombine.high %v794_v10, %v794_v10  ;;  %s984_s5 = smov 34   ;;  %s985_s6 = smov 127   ;;  %v1172_v51 = vld [vmem:[%s1239_s1] sm:$0xff] }
  0x3d   : > { %v314_v14 = vpack.i.b16 %v305_v9, %v305_v9  ;;  %vm240_vm2 = vcmask 1047688   ;;  %s986_s7 = smov 111   ;;  %vm326_vm3 = vcmask 15360   ;;  %s987_s9 = smov 126   ;;  %vm383_vm4 = vcmask 130048   ;;  %v635_v58 = vld [vmem:[%s1240_s2] sm:$0xff] }
  0x3e   : > { %v312_v13 = vrot.slane %v307_v8, %v311_v4  ;;  %233 = vrot.lane.b32.xlu0 %v874_v7, %s979_s11  ;;  %v369_v16 = vrot.slane %v364_v11, %v261_v6  ;;  %v371_v17 = vpack.i.b16 %v362_v12, %v362_v12  ;;  %s988_s20 = smov 112   ;;  %s989_s22 = smov 110   ;;  %vm459_vm5 = vcmask 146432  }
  0x3f   : > { %v319_v15 = vrot.slane %v314_v14, %v311_v4  ;;  %vm516_vm6 = vcmask 261120   ;;  %s990_s8 = smov 96   ;;  %vm592_vm7 = vcmask 277504   ;;  %s991_s26 = smov 95   ;;  %v799_v52 = vcombine.high %v1172_v51, %v1172_v51 }
  0x40   : > { %322 = vrot.lane.b32.xlu1 %v312_v13, %s980_s23  ;;  %v376_v18 = vrot.slane %v371_v17, %v261_v6  ;;  %s992_s12 = smov 94   ;;  %vm286_vm8 = vcmask 1039360   ;;  %vm343_vm9 = vcmask 1031168   ;;  %vm400_vm10 = vcmask 916480   ;;  %p1249_p11 = scmp.ne.s32.totalorder %s1246_s27, 0 }
  0x41   : > { %800 = vmatprep.mubr.msk.bf16.mxu0 %vm383_vm4, %v799_v52  ;;  %vm419_vm11 = vcmask 908288   ;;  %vm476_vm12 = vcmask 900096   ;;  %vm533_vm13 = vcmask 785408   ;;  %vm552_vm14 = vcmask 777216  }
  0x42   : > { %379 = vrot.lane.b32.xlu0 %v369_v16, %s981_s25  ;;  %vm609_vm15 = vcmask 769024  }
  0x44   : > { %324 = vrot.lane.b32.xlu1 %v319_v15, %s980_s23 }
  0x46   : > { %455 = vrot.lane.b32.xlu0 %v312_v13, %s982_s29 }
  0x48   : > { %381 = vrot.lane.b32.xlu1 %v376_v18, %s981_s25 }
  0x4a   : > { %512 = vrot.lane.b32.xlu0 %v369_v16, %s983_s30 }
  0x4c   : > { %457 = vrot.lane.b32.xlu1 %v319_v15, %s982_s29  ;;  %s807_s29 = sshll.u32 %s1040_s19, 8  ;;  %s697_s19 = scalar_lea.sflag [#allocation6], %s1123_s13 }
  0x4e   : > { %588 = vrot.lane.b32.xlu0 %v312_v13, %s984_s5 }
  0x50   : > { %514 = vrot.lane.b32.xlu1 %v376_v18, %s983_s30  ;;  %s215_s30 = scalar_lea.vmem [#allocation7], %s788_s14 }
  0x54   : > { %590 = vrot.lane.b32.xlu1 %v319_v15, %s984_s5  ;;  %s711_s5 = sshll.u32 %s215_s30, 4  ;;  %s1196_s5 = int_to_ptr.vmem [resolvable:$true] %s711_s5 }
  0x55   : > { %s907_s14 = scalar_lea.vmem %s1196_s5, 256 }
  0x56   : > { %p908_p6 = scmp.ne.s32.totalorder %s1196_s5, %s907_s14 }
  0x58   : > { %p909_p12 = pnand %p908_p6, %p1249_p11 }
  0x5a   : > { %p910_p13 = pneg %p909_p12 }
  0xac   : > { %v232_v19 = vpop.permute.xlu0 %231 }
  0xad   : > { %241 = vst.msk [vmem:[#allocation2] sm:$0xff] %vm240_vm2, %v232_v19 }
  0xb0   : > { %v234_v20 = vpop.permute.xlu0 %233 }
  0xb1   : > { %v1141_v21 = vsel %vm217_vm0, %v232_v19, %v234_v20  ;;  %243 = vst.msk [vmem:[#allocation2 + $0x10] sm:$0xff] %vm217_vm0, %v234_v20 }
  0xb2   : > { %v271_v22 = vmul.bf16 %v376_v18, %v1141_v21  ;;  %v323_v23 = vpop.permute.xlu1 %322 }
  0xb4   : > { %v1145_v24 = vld [vmem:[#allocation2] sm:$0xff]  ;;  %651 = vmatprep.subr.bf16.mxu0 %v271_v22  ;;  %v380_v29 = vpop.permute.xlu0 %379 }
  0xb5   : > { %280 = vrot.lane.b32.xlu0 %v1145_v24, %s985_s6  ;;  %v270_v25 = vmul.bf16 %v369_v16, %v1145_v24  ;;  %v331_v28 = vmul.bf16 %v323_v23, %v1145_v24  ;;  %v388_v34 = vmul.bf16 %v380_v29, %v1145_v24 }
  0xb6   : > { %v325_v27 = vpop.permute.xlu1 %324 }
  0xb7   : > { %652 = vmatpush1.bf16.msra.mxu0 %v270_v25  ;;  %v327_v33 = vsel %vm326_vm3, %v323_v23, %v325_v27 }
  0xb8   : > { %v1149_v26 = vld [vmem:[#allocation2 + $0x10] sm:$0xff]  ;;  %v456_v35 = vpop.permute.xlu0 %455  ;;  %v332_v36 = vmul.bf16 %v327_v33, %v1141_v21 }
  0xb9   : > { %284 = vrot.lane.b32.xlu1 %v1149_v26, %s985_s6  ;;  %417 = vrot.lane.b32.xlu0 %v1149_v26, %s986_s7  ;;  %v333_v30 = vmul.bf16 %v325_v27, %v1149_v26  ;;  %v464_v38 = vmul.bf16 %v456_v35, %v1145_v24 }
  0xba   : > { %v382_v31 = vpop.permute.xlu1 %381 }
  0xbb   : > { %v390_v32 = vmul.bf16 %v382_v31, %v1149_v26  ;;  %v384_v39 = vsel %vm383_vm4, %v380_v29, %v382_v31 }
  0xbc   : > { %v389_v40 = vmul.bf16 %v384_v39, %v1141_v21  ;;  %v513_v43 = vpop.permute.xlu0 %512 }
  0xbd   : > { %415 = vrot.lane.b32.xlu1 %v1141_v21, %s986_s7  ;;  %282 = vrot.lane.b32.xlu0 %v1141_v21, %s985_s6  ;;  %v521_v46 = vmul.bf16 %v513_v43, %v1145_v24 }
  0xbe   : > { %v458_v37 = vpop.permute.xlu1 %457 }
  0xbf   : > { %v466_v42 = vmul.bf16 %v458_v37, %v1149_v26  ;;  %v460_v45 = vsel %vm459_vm5, %v456_v35, %v458_v37  ;;  %v798_v35 = vcombine.low %v1172_v51, %v1172_v51 }
  0xc0   : > { %v465_v47 = vmul.bf16 %v460_v45, %v1141_v21  ;;  %v589_v53 = vpop.permute.xlu0 %588 }
  0xc1   : > { %337 = vrot.lane.b32.xlu1 %v331_v28, %s987_s9  ;;  %341 = vrot.lane.b32.xlu0 %v333_v30, %s987_s9  ;;  %v597_v57 = vmul.bf16 %v589_v53, %v1145_v24 }
  0xc2   : > { %v515_v41 = vpop.permute.xlu1 %514 }
  0xc3   : > { %v523_v44 = vmul.bf16 %v515_v41, %v1149_v26  ;;  %v517_v48 = vsel %vm516_vm6, %v513_v43, %v515_v41 }
  0xc4   : > { %v522_v49 = vmul.bf16 %v517_v48, %v1141_v21 }
  0xc5   : > { %398 = vrot.lane.b32.xlu1 %v390_v32, %s988_s20  ;;  %394 = vrot.lane.b32.xlu0 %v388_v34, %s988_s20 }
  0xc6   : > { %v591_v50 = vpop.permute.xlu1 %590 }
  0xc7   : > { %v593_v54 = vsel %vm592_vm7, %v589_v53, %v591_v50  ;;  %v599_v56 = vmul.bf16 %v591_v50, %v1149_v26 }
  0xc8   : > { %v598_v55 = vmul.bf16 %v593_v54, %v1141_v21 }
  0xc9   : > { %339 = vrot.lane.b32.xlu1 %v332_v36, %s987_s9  ;;  %470 = vrot.lane.b32.xlu0 %v464_v38, %s989_s22  ;;  %s1194_s9 = scalar_lea.hbm %s1242_s4, %s807_s29 }
  0xcd   : > { %413 = vrot.lane.b32.xlu1 %v1145_v24, %s986_s7  ;;  %396 = vrot.lane.b32.xlu0 %v389_v40, %s988_s20  ;;  %s993_s20 = smov [#allocation7]  }
  0xd1   : > { %474 = vrot.lane.b32.xlu1 %v466_v42, %s989_s22  ;;  %531 = vrot.lane.b32.xlu0 %v523_v44, %s990_s8 }
  0xd5   : > { %527 = vrot.lane.b32.xlu1 %v521_v46, %s990_s8  ;;  %472 = vrot.lane.b32.xlu0 %v465_v47, %s989_s22  ;;  %s911_s22 = sshll.u32 %s993_s20, 4  ;;  %s912_s22 = int_to_ptr.vmem [resolvable:$false] %s911_s22 }
  0xd6   : > { %p914_p8 = scmp.lt.s32.totalorder %s1196_s5, %s912_s22 }
  0xd9   : > { %529 = vrot.lane.b32.xlu1 %v522_v49, %s990_s8  ;;  %548 = vrot.lane.b32.xlu0 %v1141_v21, %s991_s26  ;;  %s913_s8 = scalar_lea.vmem %s912_s22, 512 }
  0xda   : > { %p915_p10 = scmp.lt.s32.totalorder %s913_s8, %s907_s14 }
  0xdc   : > { %p916_p0 = por %p915_p10, %p914_p8 }
  0xdd   : > { %550 = vrot.lane.b32.xlu1 %v1149_v26, %s991_s26  ;;  %546 = vrot.lane.b32.xlu0 %v1145_v24, %s991_s26 }
  0xde   : > { %p917_p2 = pnand %p916_p0, %p910_p13 }
  0xe1   : > { %605 = vrot.lane.b32.xlu1 %v598_v55, %s992_s12  ;;  %607 = vrot.lane.b32.xlu0 %v599_v56, %s992_s12 }
  0xe5   : > { %603 = vrot.lane.b32.xlu1 %v597_v57, %s992_s12  ;;  %638 = vperm.xlu0 %871, %v635_v58  }
 0x127   : > { %v281_v59 = vpop.permute.xlu0 %280 }
 0x12b   : > { %v285_v60 = vpop.permute.xlu1 %284  ;;  %v418_v61 = vpop.permute.xlu0 %417 }
 0x12f   : > { %v416_v62 = vpop.permute.xlu1 %415  ;;  %v283_v63 = vpop.permute.xlu0 %282 }
 0x130   : > { %v288_v0 = vsel %vm286_vm8, %v283_v63, %v285_v60  ;;  %v287_v1 = vsel %vm286_vm8, %v281_v59, %v283_v63  ;;  %v421_v15 = vsel %vm419_vm11, %v416_v62, %v418_v61 }
 0x131   : > { %653 = vmatprep.subr.bf16.mxu0 %v288_v0 }
 0x132   : > { %654 = vmatpush1.bf16.msra.mxu0 %v287_v1 }
 0x133   : > { %v338_v2 = vpop.permute.xlu1 %337  ;;  %v342_v3 = vpop.permute.xlu0 %341 }
 0x137   : > { %v399_v4 = vpop.permute.xlu1 %398  ;;  %v395_v5 = vpop.permute.xlu0 %394 }
 0x13b   : > { %v340_v6 = vpop.permute.xlu1 %339  ;;  %v471_v7 = vpop.permute.xlu0 %470 }
 0x13c   : > { %v345_v8 = vsel %vm343_vm9, %v340_v6, %v342_v3  ;;  %v344_v9 = vsel %vm343_vm9, %v338_v2, %v340_v6 }
 0x13d   : > { %655 = vmatprep.subr.bf16.mxu0 %v345_v8 }
 0x13e   : > { %656 = vmatpush1.bf16.msra.mxu0 %v344_v9 }
 0x13f   : > { %v414_v10 = vpop.permute.xlu1 %413  ;;  %v397_v11 = vpop.permute.xlu0 %396 }
 0x140   : > { %v402_v12 = vsel %vm400_vm10, %v397_v11, %v399_v4  ;;  %v401_v13 = vsel %vm400_vm10, %v395_v5, %v397_v11  ;;  %v420_v17 = vsel %vm419_vm11, %v414_v10, %v416_v62 }
 0x141   : > { %657 = vmatprep.subr.bf16.mxu0 %v402_v12 }
 0x142   : > { %658 = vmatpush1.bf16.msra.mxu0 %v401_v13 }
 0x143   : > { %v475_v14 = vpop.permute.xlu1 %474  ;;  %v532_v16 = vpop.permute.xlu0 %531  ;;  %659 = vmatprep.subr.bf16.mxu0 %v421_v15 }
 0x146   : > { %660 = vmatpush1.bf16.msra.mxu0 %v420_v17 }
 0x147   : > { %v528_v18 = vpop.permute.xlu1 %527  ;;  %v473_v19 = vpop.permute.xlu0 %472 }
 0x148   : > { %v478_v20 = vsel %vm476_vm12, %v473_v19, %v475_v14  ;;  %v477_v21 = vsel %vm476_vm12, %v471_v7, %v473_v19 }
 0x149   : > { %661 = vmatprep.subr.bf16.mxu0 %v478_v20 }
 0x14a   : > { %662 = vmatpush1.bf16.msra.mxu0 %v477_v21 }
 0x14b   : > { %v530_v22 = vpop.permute.xlu1 %529  ;;  %v549_v23 = vpop.permute.xlu0 %548 }
 0x14c   : > { %v535_v24 = vsel %vm533_vm13, %v530_v22, %v532_v16  ;;  %v534_v25 = vsel %vm533_vm13, %v528_v18, %v530_v22 }
 0x14d   : > { %663 = vmatprep.subr.bf16.mxu0 %v535_v24 }
 0x14e   : > { %664 = vmatpush1.bf16.msra.mxu0 %v534_v25 }
 0x14f   : > { %v551_v26 = vpop.permute.xlu1 %550  ;;  %v547_v27 = vpop.permute.xlu0 %546 }
 0x150   : > { %v554_v28 = vsel %vm552_vm14, %v549_v23, %v551_v26  ;;  %v553_v29 = vsel %vm552_vm14, %v547_v27, %v549_v23 }
 0x151   : > { %665 = vmatprep.subr.bf16.mxu0 %v554_v28 }
 0x152   : > { %666 = vmatpush1.bf16.msra.mxu0 %v553_v29 }
 0x153   : > { %v606_v30 = vpop.permute.xlu1 %605  ;;  %v608_v31 = vpop.permute.xlu0 %607 }
 0x154   : > { %v611_v32 = vsel %vm609_vm15, %v606_v30, %v608_v31 }
 0x155   : > { %667 = vmatprep.subr.bf16.mxu0 %v611_v32 }
 0x157   : > { %v604_v33 = vpop.permute.xlu1 %603 }
 0x158   : > { %v610_v34 = vsel %vm609_vm15, %v604_v33, %v606_v30 }
 0x159   : > { %668 = vmatpush1.bf16.msra.mxu0 %v610_v34 }
 0x15c   : > { %684 = vmatmul.mubr.bf16.vlgmr.msra.gmra.mrb[0].mxu0 %v798_v35 }
 0x164   : > { %v639_v36 = vpop.permute.xlu0 %638 }
 0x22f   : > { %v685_v37 = vpop.f32.mrb[0].mxu0 }
 0x230   : > { %v686_v38 = vadd.f32 %v685_v37, %v639_v36  ;;  %v687_v39 = vpop.f32.mrb[1].mxu0 }
 0x231   : > { %v688_v40 = vadd.f32 %v687_v39, %v639_v36  ;;  %v689_v41 = vpop.f32.mrb[2].mxu0 }
 0x232   : > { %v692_v42 = vmax.f32 %v686_v38, 0.0  ;;  %v690_v43 = vpop.f32.mrb[3].mxu0 }
 0x233   : > { %v693_v44 = vmax.f32 %v688_v40, 0.0 }
 0x234   : > { %694 = vst [vmem:[%s215_s30] sm:$0xff] %v692_v42 }
 0x235   : > { %695 = vst [vmem:[%s215_s30 + $0x8] sm:$0xff] %v693_v44 }
 0x236   : > { %920 = shalt.err (!%p917_p2)
}
 0x237   : > { %s921_s13 = scalar_lea.hbm %s1194_s9, 256  ;;  %s925_s26 = scalar_lea.hbm %s1242_s4, 512 }
 0x238   : > { %p922_p4 = scmp.ne.s32.totalorder %s1194_s9, %s921_s13  ;;  %p926_p9 = scmp.lt.u32.totalorder %s1194_s9, %s1242_s4 }
 0x239   : > { %p927_p1 = scmp.lt.u32.totalorder %s925_s26, %s921_s13  ;;  %p929_p6 = scmp.lt.u32.totalorder %s921_s13, %s1194_s9 }
 0x23a   : > { %p923_p5 = pnand %p922_p4, %p1249_p11 }
 0x23b   : > { %p928_p3 = por %p927_p1, %p926_p9 }
 0x23c   : > { %p924_p7 = pneg %p923_p5 }
 0x23d   : > { %p930_p12 = por %p929_p6, %p928_p3 }
 0x23f   : > { %p931_p13 = pnand %p930_p12, %p924_p7 }
 0x241   : > { %934 = shalt.err (!%p931_p13)
}
 0x242   : > { %810 = dma.vmem_to_hbm [thread:$0]  (%p1249_p11), %s1196_s5, 256, %s1194_s9, %s697_s19  }
 0x243 PF: > { %s723_s25 = sand.u32 1, %s961_s15   ;;  %p1250_p8 = scmp.ne.s32.totalorder %s1247_s28, 0 }
 0x244   : > { %p1251_p10 = scmp.ge.s32.totalorder %s973_s18, 2  ;;  %s724_s29 = scalar_lea.sflag [#allocation6], %s723_s25 }
 0x246   : > { %p817_p0 = pnand %p1251_p10, %p1250_p8 }
 0x248   : > { %956 = dma.done.wait (!%p817_p0), %s724_s29, 256  }
 0x249   : > { %958 = vsyncadd (!%p817_p0), %s724_s29, 4294967040  ;;  %p17_p2 = scmp.ge.s32.totalorder %s1044_s21, 4   ;;  %s1252_s15 = smov %s965_s16 }
 0x24a   : > { %s1253_s16 = smov %s969_s17  ;;  %s1254_s17 = smov %s1056_s24 }
 0x24b   : > { %s1255_s18 = smov %s1044_s21  ;;  %19 = sbr.rel (!%p17_p2) target bundleno = 5 (0x5), region = 81 }
 0x252   :  { %729 = vsyncpa [#allocation5], 1 }
 0x253   :  { %731 = vsyncpa [#allocation5 + $0x1], 1 }
 0x254   :  { %732 = vsyncpa [#allocation6], 1 }
 0x255   :  { %734 = vsyncpa [#allocation6 + $0x1], 1 }

</bundles_post_ra>
